<compile_context>
chip_gen: v7x
topology: tpu7x:2x2x1
jax: 0.10.0
libtpu: 0.0.40
codegen_flags: <defaults>
</compile_context>

<pallas_src>
import jax
import jax.numpy as jnp
from jax.experimental import pallas as pl
from jax.experimental.pallas import tpu as pltpu


def _round_up(x, m):
    return (x + m - 1) // m * m


def fc_t_kernel(x_ref, w3_ref, b3_ref, w4_ref, b4_ref, w5_ref, b5_ref, o_ref):
    x = x_ref[...].astype(jnp.float32)          # x.float()
    # linear3: inp_dim -> inp_dim/2   (drop3 == identity in eval mode)
    h = jnp.dot(x, w3_ref[...], preferred_element_type=jnp.float32) + b3_ref[...]
    # linear4: inp_dim/2 -> inp_dim/4 (drop4 == identity)
    h = jnp.dot(h, w4_ref[...], preferred_element_type=jnp.float32) + b4_ref[...]
    # linear5: inp_dim/4 -> op_dim (lane-padded)   (drop5 == identity)
    o_ref[...] = jnp.dot(h, w5_ref[...], preferred_element_type=jnp.float32) + b5_ref[...]


def _vmem_capacity_bytes():
    """Per-TensorCore VMEM capacity; conservative fallback = v7x (64 MiB)."""
    try:
        return int(pltpu.get_tpu_info().vmem_capacity_bytes)
    except Exception:
        return 64 << 20


def _estimate_vmem_bytes(bt, inp_dim, h1, h2, op_pad, single_buffer_weights):
    wmul = 1 if single_buffer_weights else 2
    weights = 4 * wmul * (inp_dim * h1 + h1 * h2 + h2 * op_pad + h1 + h2 + op_pad)
    # double-buffered x / out tiles + headroom for fp32 intermediates
    acts = 4 * bt * (2 * inp_dim + 2 * op_pad + 2 * h1 + 2 * h2)
    return weights + acts


def fc_t_forward(x, params, *, batch_tile=None, single_buffer_weights=True):
    """params: dict with w3,b3,w4,b4,w5,b5; weights already laid out [in, out]."""
    B, inp_dim = x.shape
    w3, b3 = params["w3"], params["b3"]
    w4, b4 = params["w4"], params["b4"]
    w5, b5 = params["w5"], params["b5"]
    h1, h2, op_dim = w3.shape[1], w4.shape[1], w5.shape[1]

    # ---- lane-dense output: pad the final projection to a multiple of 128 ----
    # (exact: padded columns of w5/b5 are zero and are sliced off afterwards;
    #  in real use the padded w5p/b5p can be precomputed once.)
    op_pad = _round_up(max(op_dim, 1), 128)
    if op_pad != op_dim:
        w5p = jnp.pad(w5, ((0, 0), (0, op_pad - op_dim)))
        b5p = jnp.pad(b5, ((0, 0), (0, op_pad - op_dim)))
    else:
        w5p, b5p = w5, b5

    # ---- batch-tile selection under a generation-aware VMEM budget ----
    vmem_cap = _vmem_capacity_bytes()
    budget = int(vmem_cap * 0.75)
    bt = 512 if batch_tile is None else int(batch_tile)
    bt = min(bt, _round_up(B, 8))
    while bt > 8 and _estimate_vmem_bytes(bt, inp_dim, h1, h2, op_pad,
                                          single_buffer_weights) > budget:
        bt //= 2
    bt = max(8, (bt // 8) * 8)
    # keep >=2 grid steps for large tiles so the "parallel" axis can use both
    # TensorCores on v7x (irrelevant on 1-TC v5e/v6e, harmless there).
    if bt >= 256 and _round_up(B, bt) // bt < 2:
        bt //= 2
    B_pad = _round_up(B, bt)

    x_p = jnp.pad(x, ((0, B_pad - B), (0, 0))) if B_pad != B else x

    est = _estimate_vmem_bytes(bt, inp_dim, h1, h2, op_pad, single_buffer_weights)
    vmem_limit = int(min(max(vmem_cap - (8 << 20), 16 << 20),
                         max(32 << 20, est * 5 // 4)))

    def _call(use_single_buffer):
        const = lambda i: (0, 0)  # weights/biases resident every grid step
        if use_single_buffer:
            wspec = lambda shape: pl.BlockSpec(shape, const,
                                               pipeline_mode=pl.Buffered(1))
        else:
            wspec = lambda shape: pl.BlockSpec(shape, const)
        return pl.pallas_call(
            fc_t_kernel,
            out_shape=jax.ShapeDtypeStruct((B_pad, op_pad), jnp.float32),
            grid_spec=pltpu.PrefetchScalarGridSpec(
                num_scalar_prefetch=0,
                grid=(B_pad // bt,),
                in_specs=[
                    pl.BlockSpec((bt, inp_dim), lambda i: (i, 0)),  # x tile
                    wspec((inp_dim, h1)),                            # w3
                    wspec((1, h1)),                                  # b3
                    wspec((h1, h2)),                                 # w4
                    wspec((1, h2)),                                  # b4
                    wspec((h2, op_pad)),                             # w5 (padded)
                    wspec((1, op_pad)),                              # b5 (padded)
                ],
                out_specs=pl.BlockSpec((bt, op_pad), lambda i: (i, 0)),
            ),
            compiler_params=pltpu.CompilerParams(
                dimension_semantics=("parallel",),
                vmem_limit_bytes=vmem_limit,
            ),
        )(x_p, w3, b3, w4, b4, w5p, b5p)

    if single_buffer_weights:
        try:
            out = _call(True)
        except Exception:
            # Fallback if this JAX build rejects pipeline_mode / Buffered(1).
            out = _call(False)
    else:
        out = _call(False)

    return out[:B, :op_dim]


def init_fc_t_params(key, inp_dim, op_dim):
    """Deterministic init mirroring the nn.Linear shapes of fc_t.

    Only linear3/4/5 affect the output (linear1/2 results are discarded in the
    PyTorch forward), so only those are materialized. PyTorch stores W as
    [out, in]; we create [out, in] then transpose to [in, out] for the kernel.
    """
    dims = [(inp_dim, inp_dim // 2),       # linear3
            (inp_dim // 2, inp_dim // 4),  # linear4
            (inp_dim // 4, op_dim)]        # linear5
    params = {}
    for idx, (fan_in, fan_out) in zip((3, 4, 5), dims):
        key, kw, kb = jax.random.split(key, 3)
        bound = 1.0 / jnp.sqrt(fan_in)
        w = jax.random.uniform(kw, (fan_out, fan_in), jnp.float32, -bound, bound)
        b = jax.random.uniform(kb, (fan_out,), jnp.float32, -bound, bound)
        params[f"w{idx}"] = w.T                      # [in, out]
        params[f"b{idx}"] = b.reshape(1, fan_out)    # [1, out] for broadcast
    return params


def fc_t_reference(x, params):
    h = x.astype(jnp.float32)
    h = h @ params["w3"] + params["b3"]
    h = h @ params["w4"] + params["b4"]
    h = h @ params["w5"] + params["b5"]
    return h


if __name__ == "__main__":
    inp_dim, op_dim = 32, 8
    B = 50  # ragged on purpose: exercises batch padding + output slicing

    key = jax.random.PRNGKey(0)
    kx, kp = jax.random.split(key)
    x = jax.random.normal(kx, (B, inp_dim), jnp.float32)
    params = init_fc_t_params(kp, inp_dim, op_dim)

    out = fc_t_forward(x, params)
    out = jax.block_until_ready(out)

    ref = fc_t_reference(x, params)
    assert out.shape == (B, op_dim)
    assert jnp.allclose(out, ref, atol=1e-4, rtol=1e-4), "mismatch vs reference"

    print("KERNEL_OK")
</pallas_src>

<mosaic_0001>
module attributes {stable_mosaic.version = 11 : i64} {
  func.func @fc_t_kernel(%arg0: i32, %arg1: memref<56x32xf32, #tpu.memory_space<vmem>>, %arg2: memref<32x16xf32, #tpu.memory_space<vmem>>, %arg3: memref<1x16xf32, #tpu.memory_space<vmem>>, %arg4: memref<16x8xf32, #tpu.memory_space<vmem>>, %arg5: memref<1x8xf32, #tpu.memory_space<vmem>>, %arg6: memref<8x128xf32, #tpu.memory_space<vmem>>, %arg7: memref<1x128xf32, #tpu.memory_space<vmem>>, %arg8: memref<56x128xf32, #tpu.memory_space<vmem>>) attributes {dimension_semantics = [#tpu.dimension_semantics<parallel>], iteration_bounds = array<i64: 1>, scalar_prefetch = 0 : i64, scratch_operands = 0 : i64, tpu.core_type = #tpu.core_type<tc>, window_params = [{transform_indices = @transform_0, window_bounds = array<i64: 56, 32>}, {pipeline_mode = #tpu.pipeline_mode<synchronous>, transform_indices = @transform_1, window_bounds = array<i64: 32, 16>}, {pipeline_mode = #tpu.pipeline_mode<synchronous>, transform_indices = @transform_2, window_bounds = array<i64: 1, 16>}, {pipeline_mode = #tpu.pipeline_mode<synchronous>, transform_indices = @transform_3, window_bounds = array<i64: 16, 8>}, {pipeline_mode = #tpu.pipeline_mode<synchronous>, transform_indices = @transform_4, window_bounds = array<i64: 1, 8>}, {pipeline_mode = #tpu.pipeline_mode<synchronous>, transform_indices = @transform_5, window_bounds = array<i64: 8, 128>}, {pipeline_mode = #tpu.pipeline_mode<synchronous>, transform_indices = @transform_6, window_bounds = array<i64: 1, 128>}, {transform_indices = @transform_7, window_bounds = array<i64: 56, 128>}]} {
    %c0 = arith.constant 0 : index
    %c0_0 = arith.constant 0 : index
    %0 = vector.load %arg1[%c0, %c0_0] : memref<56x32xf32, #tpu.memory_space<vmem>>, vector<56x32xf32>
    %c0_1 = arith.constant 0 : index
    %c0_2 = arith.constant 0 : index
    %1 = vector.load %arg2[%c0_1, %c0_2] : memref<32x16xf32, #tpu.memory_space<vmem>>, vector<32x16xf32>
    %cst = arith.constant dense<0.000000e+00> : vector<56x16xf32>
    %2 = tpu.matmul %0, %1, %cst {dimension_numbers = #tpu.dot_dimension_numbers<[1], [0], [0], [1], [0, 0, 1, 1], [], []>} : vector<56x32xf32>, vector<32x16xf32>, vector<56x16xf32> -> vector<56x16xf32>
    %c0_3 = arith.constant 0 : index
    %c0_4 = arith.constant 0 : index
    %3 = vector.load %arg3[%c0_3, %c0_4] : memref<1x16xf32, #tpu.memory_space<vmem>>, vector<1x16xf32>
    %4 = vector.broadcast %3 : vector<1x16xf32> to vector<56x16xf32>
    %5 = arith.addf %2, %4 : vector<56x16xf32>
    %c0_5 = arith.constant 0 : index
    %c0_6 = arith.constant 0 : index
    %6 = vector.load %arg4[%c0_5, %c0_6] : memref<16x8xf32, #tpu.memory_space<vmem>>, vector<16x8xf32>
    %cst_7 = arith.constant dense<0.000000e+00> : vector<56x8xf32>
    %7 = tpu.matmul %5, %6, %cst_7 {dimension_numbers = #tpu.dot_dimension_numbers<[1], [0], [0], [1], [0, 0, 1, 1], [], []>} : vector<56x16xf32>, vector<16x8xf32>, vector<56x8xf32> -> vector<56x8xf32>
    %c0_8 = arith.constant 0 : index
    %c0_9 = arith.constant 0 : index
    %8 = vector.load %arg5[%c0_8, %c0_9] : memref<1x8xf32, #tpu.memory_space<vmem>>, vector<1x8xf32>
    %9 = vector.broadcast %8 : vector<1x8xf32> to vector<56x8xf32>
    %10 = arith.addf %7, %9 : vector<56x8xf32>
    %c0_10 = arith.constant 0 : index
    %c0_11 = arith.constant 0 : index
    %11 = vector.load %arg6[%c0_10, %c0_11] : memref<8x128xf32, #tpu.memory_space<vmem>>, vector<8x128xf32>
    %cst_12 = arith.constant dense<0.000000e+00> : vector<56x128xf32>
    %12 = tpu.matmul %10, %11, %cst_12 {dimension_numbers = #tpu.dot_dimension_numbers<[1], [0], [0], [1], [0, 0, 1, 1], [], []>} : vector<56x8xf32>, vector<8x128xf32>, vector<56x128xf32> -> vector<56x128xf32>
    %c0_13 = arith.constant 0 : index
    %c0_14 = arith.constant 0 : index
    %13 = vector.load %arg7[%c0_13, %c0_14] : memref<1x128xf32, #tpu.memory_space<vmem>>, vector<1x128xf32>
    %14 = vector.broadcast %13 : vector<1x128xf32> to vector<56x128xf32>
    %15 = arith.addf %12, %14 : vector<56x128xf32>
    %c0_15 = arith.constant 0 : index
    %c0_16 = arith.constant 0 : index
    %16 = vector.load %arg8[%c0_15, %c0_16] : memref<56x128xf32, #tpu.memory_space<vmem>>, vector<56x128xf32>
    tpu.vector_store %arg8[%c0_15, %c0_16], %15 {strides = array<i32>} : memref<56x128xf32, #tpu.memory_space<vmem>>, vector<56x128xf32>,
    return
  }
  func.func @transform_0(%arg0: i32) -> (i32, i32) {
    %c0_i32 = arith.constant 0 : i32
    %c0_i32_0 = arith.constant 0 : i32
    return %arg0, %c0_i32 : i32, i32
  }
  func.func @transform_1(%arg0: i32) -> (i32, i32) {
    %c0_i32 = arith.constant 0 : i32
    %c0_i32_0 = arith.constant 0 : i32
    %c0_i32_1 = arith.constant 0 : i32
    return %c0_i32, %c0_i32_0 : i32, i32
  }
  func.func @transform_2(%arg0: i32) -> (i32, i32) {
    %c0_i32 = arith.constant 0 : i32
    %c0_i32_0 = arith.constant 0 : i32
    %c0_i32_1 = arith.constant 0 : i32
    return %c0_i32, %c0_i32_0 : i32, i32
  }
  func.func @transform_3(%arg0: i32) -> (i32, i32) {
    %c0_i32 = arith.constant 0 : i32
    %c0_i32_0 = arith.constant 0 : i32
    %c0_i32_1 = arith.constant 0 : i32
    return %c0_i32, %c0_i32_0 : i32, i32
  }
  func.func @transform_4(%arg0: i32) -> (i32, i32) {
    %c0_i32 = arith.constant 0 : i32
    %c0_i32_0 = arith.constant 0 : i32
    %c0_i32_1 = arith.constant 0 : i32
    return %c0_i32, %c0_i32_0 : i32, i32
  }
  func.func @transform_5(%arg0: i32) -> (i32, i32) {
    %c0_i32 = arith.constant 0 : i32
    %c0_i32_0 = arith.constant 0 : i32
    %c0_i32_1 = arith.constant 0 : i32
    return %c0_i32, %c0_i32_0 : i32, i32
  }
  func.func @transform_6(%arg0: i32) -> (i32, i32) {
    %c0_i32 = arith.constant 0 : i32
    %c0_i32_0 = arith.constant 0 : i32
    %c0_i32_1 = arith.constant 0 : i32
    return %c0_i32, %c0_i32_0 : i32, i32
  }
  func.func @transform_7(%arg0: i32) -> (i32, i32) {
    %c0_i32 = arith.constant 0 : i32
    %c0_i32_0 = arith.constant 0 : i32
    return %arg0, %c0_i32 : i32, i32
  }
}

module attributes {stable_mosaic.version = 11 : i64} {
  func.func @fc_t_kernel(%arg0: i32, %arg1: memref<56x32xf32, #tpu.memory_space<vmem>>, %arg2: memref<32x16xf32, #tpu.memory_space<vmem>>, %arg3: memref<1x16xf32, #tpu.memory_space<vmem>>, %arg4: memref<16x8xf32, #tpu.memory_space<vmem>>, %arg5: memref<1x8xf32, #tpu.memory_space<vmem>>, %arg6: memref<8x128xf32, #tpu.memory_space<vmem>>, %arg7: memref<1x128xf32, #tpu.memory_space<vmem>>, %arg8: memref<56x128xf32, #tpu.memory_space<vmem>>) attributes {dimension_semantics = [#tpu.dimension_semantics<parallel>], iteration_bounds = array<i64: 1>, scalar_prefetch = 0 : i64, scratch_operands = 0 : i64, tpu.core_type = #tpu.core_type<tc>, window_params = [{transform_indices = @transform_0, window_bounds = array<i64: 56, 32>}, {pipeline_mode = #tpu.pipeline_mode<synchronous>, transform_indices = @transform_1, window_bounds = array<i64: 32, 16>}, {pipeline_mode = #tpu.pipeline_mode<synchronous>, transform_indices = @transform_2, window_bounds = array<i64: 1, 16>}, {pipeline_mode = #tpu.pipeline_mode<synchronous>, transform_indices = @transform_3, window_bounds = array<i64: 16, 8>}, {pipeline_mode = #tpu.pipeline_mode<synchronous>, transform_indices = @transform_4, window_bounds = array<i64: 1, 8>}, {pipeline_mode = #tpu.pipeline_mode<synchronous>, transform_indices = @transform_5, window_bounds = array<i64: 8, 128>}, {pipeline_mode = #tpu.pipeline_mode<synchronous>, transform_indices = @transform_6, window_bounds = array<i64: 1, 128>}, {transform_indices = @transform_7, window_bounds = array<i64: 56, 128>}]} {
    %c0 = arith.constant 0 : index
    %c0_0 = arith.constant 0 : index
    %0 = vector.load %arg1[%c0, %c0_0] : memref<56x32xf32, #tpu.memory_space<vmem>>, vector<56x32xf32>
    %c0_1 = arith.constant 0 : index
    %c0_2 = arith.constant 0 : index
    %1 = vector.load %arg2[%c0_1, %c0_2] : memref<32x16xf32, #tpu.memory_space<vmem>>, vector<32x16xf32>
    %cst = arith.constant dense<0.000000e+00> : vector<56x16xf32>
    %2 = tpu.matmul %0, %1, %cst {dimension_numbers = #tpu.dot_dimension_numbers<[1], [0], [0], [1], [0, 0, 1, 1], [], []>} : vector<56x32xf32>, vector<32x16xf32>, vector<56x16xf32> -> vector<56x16xf32>
    %c0_3 = arith.constant 0 : index
    %c0_4 = arith.constant 0 : index
    %3 = vector.load %arg3[%c0_3, %c0_4] : memref<1x16xf32, #tpu.memory_space<vmem>>, vector<1x16xf32>
    %4 = vector.broadcast %3 : vector<1x16xf32> to vector<56x16xf32>
    %5 = arith.addf %2, %4 : vector<56x16xf32>
    %c0_5 = arith.constant 0 : index
    %c0_6 = arith.constant 0 : index
    %6 = vector.load %arg4[%c0_5, %c0_6] : memref<16x8xf32, #tpu.memory_space<vmem>>, vector<16x8xf32>
    %cst_7 = arith.constant dense<0.000000e+00> : vector<56x8xf32>
    %7 = tpu.matmul %5, %6, %cst_7 {dimension_numbers = #tpu.dot_dimension_numbers<[1], [0], [0], [1], [0, 0, 1, 1], [], []>} : vector<56x16xf32>, vector<16x8xf32>, vector<56x8xf32> -> vector<56x8xf32>
    %c0_8 = arith.constant 0 : index
    %c0_9 = arith.constant 0 : index
    %8 = vector.load %arg5[%c0_8, %c0_9] : memref<1x8xf32, #tpu.memory_space<vmem>>, vector<1x8xf32>
    %9 = vector.broadcast %8 : vector<1x8xf32> to vector<56x8xf32>
    %10 = arith.addf %7, %9 : vector<56x8xf32>
    %c0_10 = arith.constant 0 : index
    %c0_11 = arith.constant 0 : index
    %11 = vector.load %arg6[%c0_10, %c0_11] : memref<8x128xf32, #tpu.memory_space<vmem>>, vector<8x128xf32>
    %cst_12 = arith.constant dense<0.000000e+00> : vector<56x128xf32>
    %12 = tpu.matmul %10, %11, %cst_12 {dimension_numbers = #tpu.dot_dimension_numbers<[1], [0], [0], [1], [0, 0, 1, 1], [], []>} : vector<56x8xf32>, vector<8x128xf32>, vector<56x128xf32> -> vector<56x128xf32>
    %c0_13 = arith.constant 0 : index
    %c0_14 = arith.constant 0 : index
    %13 = vector.load %arg7[%c0_13, %c0_14] : memref<1x128xf32, #tpu.memory_space<vmem>>, vector<1x128xf32>
    %14 = vector.broadcast %13 : vector<1x128xf32> to vector<56x128xf32>
    %15 = arith.addf %12, %14 : vector<56x128xf32>
    %c0_15 = arith.constant 0 : index
    %c0_16 = arith.constant 0 : index
    %16 = vector.load %arg8[%c0_15, %c0_16] : memref<56x128xf32, #tpu.memory_space<vmem>>, vector<56x128xf32>
    tpu.vector_store %arg8[%c0_15, %c0_16], %15 {strides = array<i32>} : memref<56x128xf32, #tpu.memory_space<vmem>>, vector<56x128xf32>,
    return
  }
  func.func @transform_0(%arg0: i32) -> (i32, i32) {
    %c0_i32 = arith.constant 0 : i32
    %c0_i32_0 = arith.constant 0 : i32
    return %arg0, %c0_i32 : i32, i32
  }
  func.func @transform_1(%arg0: i32) -> (i32, i32) {
    %c0_i32 = arith.constant 0 : i32
    %c0_i32_0 = arith.constant 0 : i32
    %c0_i32_1 = arith.constant 0 : i32
    return %c0_i32, %c0_i32_0 : i32, i32
  }
  func.func @transform_2(%arg0: i32) -> (i32, i32) {
    %c0_i32 = arith.constant 0 : i32
    %c0_i32_0 = arith.constant 0 : i32
    %c0_i32_1 = arith.constant 0 : i32
    return %c0_i32, %c0_i32_0 : i32, i32
  }
  func.func @transform_3(%arg0: i32) -> (i32, i32) {
    %c0_i32 = arith.constant 0 : i32
    %c0_i32_0 = arith.constant 0 : i32
    %c0_i32_1 = arith.constant 0 : i32
    return %c0_i32, %c0_i32_0 : i32, i32
  }
  func.func @transform_4(%arg0: i32) -> (i32, i32) {
    %c0_i32 = arith.constant 0 : i32
    %c0_i32_0 = arith.constant 0 : i32
    %c0_i32_1 = arith.constant 0 : i32
    return %c0_i32, %c0_i32_0 : i32, i32
  }
  func.func @transform_5(%arg0: i32) -> (i32, i32) {
    %c0_i32 = arith.constant 0 : i32
    %c0_i32_0 = arith.constant 0 : i32
    %c0_i32_1 = arith.constant 0 : i32
    return %c0_i32, %c0_i32_0 : i32, i32
  }
  func.func @transform_6(%arg0: i32) -> (i32, i32) {
    %c0_i32 = arith.constant 0 : i32
    %c0_i32_0 = arith.constant 0 : i32
    %c0_i32_1 = arith.constant 0 : i32
    return %c0_i32, %c0_i32_0 : i32, i32
  }
  func.func @transform_7(%arg0: i32) -> (i32, i32) {
    %c0_i32 = arith.constant 0 : i32
    %c0_i32_0 = arith.constant 0 : i32
    return %arg0, %c0_i32 : i32, i32
  }
}

</mosaic_0001>

<bundles_post_ra>
// kernel: tpu_custom_call.1
= control target key start
LH: loop header
LB: loop body
LE: loop exit
PB: predicated region body
PF: predicated region fallthrough
CT: control target
= control target key end

     0   :  { %v621_v3 = vmov 0.0|0.0   ;;  %vm622_vm0 = vmmov 0   ;;  %v623_v6 = vmov 0.0   ;;  %s794_s0 = inlined_call_operand.vmem [shape: f32[56,32], index: 0, kind: input, shape index: {}]   ;;  %s795_s1 = inlined_call_operand.vmem [shape: f32[32,16], index: 1, kind: input, shape index: {}]   ;;  %s796_s2 = inlined_call_operand.vmem [shape: f32[1,16], index: 2, kind: input, shape index: {}]   ;;  %s797_s3 = inlined_call_operand.vmem [shape: f32[16,8], index: 3, kind: input, shape index: {}]   ;;  %s798_s4 = inlined_call_operand.vmem [shape: f32[1,8], index: 4, kind: input, shape index: {}]   ;;  %s799_s5 = inlined_call_operand.vmem [shape: f32[8,128], index: 5, kind: input, shape index: {}]   ;;  %s800_s6 = inlined_call_operand.vmem [shape: f32[1,128], index: 6, kind: input, shape index: {}]   ;;  %s801_s7 = inlined_call_operand.hbm [shape: f32[56,128], index: 7, kind: output, shape index: {}]  }
   0x1   :  { %v34_v0 = vld [vmem:[%s795_s1] sm:$0xff]  ;;  %v35_v1 = vld [vmem:[%s795_s1 + $0x8] sm:$0xff]  ;;  %v36_v2 = vld [vmem:[%s795_s1 + $0x10] sm:$0xff]  ;;  %580 = vmatprep.subr.bf16.mxu0 %v621_v3  ;;  %511 = vmatprep.mubr.msk.f32.mxu0 %vm622_vm0, %v623_v6 }
   0x2   :  { %v581_v4 = vpack.c.bf16 %v35_v1, %v34_v0  ;;  %v37_v5 = vld [vmem:[%s795_s1 + $0x18] sm:$0xff]  ;;  %589 = vmatprep.subr.bf16.mxu1 %v621_v3  ;;  %545 = vmatprep.mubr.msk.f32.mxu1 %vm622_vm0, %v623_v6  ;;  %v167_v8 = vld [vmem:[%s797_s3] sm:$0xff]  ;;  %v168_v9 = vld [vmem:[%s797_s3 + $0x8] sm:$0xff] }
   0x3   :  { %v584_v7 = vpack.c.bf16 %v37_v5, %v36_v2 }
   0x4   :  { %582 = vmatpush3.bf16.msra.mxu0 %v581_v4 }
   0x5   :  { %583 = vmatprep.subr.bf16.mxu0 %v621_v3 }
   0x6   :  { %12 = vsyncpa [#allocation3], 0  ;;  %v587_v10 = vpack.c.bf16 %v168_v9, %v167_v8  ;;  %v27_v11 = vld [vmem:[%s794_s0] sm:$0xff]  ;;  %vm45_vm1 = vcmask 261120   ;;  %v28_v12 = vld [vmem:[%s794_s0 + $0x8] sm:$0xff]  ;;  %vm176_vm2 = vcmask 130048  }
   0x7   :  { %v29_v13 = vld [vmem:[%s794_s0 + $0x10] sm:$0xff]  ;;  %v30_v14 = vld [vmem:[%s794_s0 + $0x18] sm:$0xff]  ;;  %v31_v15 = vld [vmem:[%s794_s0 + $0x20] sm:$0xff]  ;;  %vm306_vm3 = vcmask 64512  }
   0x8   :  { %585 = vmatpush3.bf16.msra.mxu0 %v584_v7  ;;  %590 = vmatpush3.bf16.msra.mxu1 %v587_v10  ;;  %v32_v16 = vld [vmem:[%s794_s0 + $0x28] sm:$0xff]  ;;  %v33_v17 = vld [vmem:[%s794_s0 + $0x30] sm:$0xff]  ;;  %v451_v18 = vld [vmem:[%s796_s2] ss:$0 sm:$0xff] }
   0x9   :  { %586 = vmatprep.subr.bf16.mxu0 %v621_v3  ;;  %557 = vmatprep.subr.mxu1 %v623_v6  ;;  %v298_v31 = vld [vmem:[%s799_s5] sm:$0xff] }
   0xa   :  { %v459_v41 = vld [vmem:[%s798_s4] ss:$0 sm:$0xff] }
   0xb   :  { %512 = vmatmul.mubr.msk.f32.vlgmr.msra.gmra.mrb[0].mxu0 %vm45_vm1, %v27_v11  ;;  %v467_v63 = vld [vmem:[%s800_s6] ss:$0 sm:$0xff]  ;;  %s624_s6 = smov [#allocation2]  }
   0xc   :  { %514 = vmatprep.mubr.msk.f32.mxu0 %vm622_vm0, %v623_v6  ;;  %588 = vmatpush3.bf16.msra.mxu0 %v587_v10  ;;  %s440_s29 = sshll.u32 %s624_s6, 4  ;;  %s441_s29 = int_to_ptr.vmem [resolvable:$true] %s440_s29 }
   0xd   :  { %s597_s30 = scalar_lea.vmem %s441_s29, 896  ;;  %p602_p1 = scmp.lt.s32.totalorder %s441_s29, %s441_s29 }
   0xe   :  { %p598_p0 = scmp.ne.s32.totalorder %s441_s29, %s597_s30  ;;  %p603_p2 = scmp.lt.s32.totalorder %s597_s30, %s597_s30 }
   0xf   :  { %515 = vmatmul.mubr.msk.f32.gmra.mrb[2].mxu0 %vm45_vm1, %v28_v12 }
  0x10   :  { %517 = vmatprep.mubr.msk.f32.mxu0 %vm622_vm0, %v623_v6  ;;  %p604_p3 = por %p603_p2, %p602_p1 }
  0x12   :  { %p605_p4 = pnand %p604_p3, %p598_p0 }
  0x13   :  { %518 = vmatmul.mubr.msk.f32.gmra.mrb[4].mxu0 %vm45_vm1, %v29_v13 }
  0x14   :  { %520 = vmatprep.mubr.msk.f32.mxu0 %vm622_vm0, %v623_v6 }
  0x17   :  { %521 = vmatmul.mubr.msk.f32.gmra.mrb[6].mxu0 %vm45_vm1, %v30_v14 }
  0x18   :  { %523 = vmatprep.mubr.msk.f32.mxu0 %vm622_vm0, %v623_v6 }
  0x1b   :  { %524 = vmatmul.mubr.msk.f32.gmra.mrb[8].mxu0 %vm45_vm1, %v31_v15 }
  0x1c   :  { %526 = vmatprep.mubr.msk.f32.mxu0 %vm622_vm0, %v623_v6 }
  0x1f   :  { %527 = vmatmul.mubr.msk.f32.gmra.mrb[10].mxu0 %vm45_vm1, %v32_v16 }
  0x20   :  { %529 = vmatprep.mubr.msk.f32.mxu0 %vm622_vm0, %v623_v6 }
  0x23   :  { %530 = vmatmul.mubr.msk.f32.gmra.mrb[12].mxu0 %vm45_vm1, %v33_v17 }
  0x24   :  { %536 = vmatprep.mubr.msk.f32.mxu0 %vm622_vm0, %v623_v6 }
  0xde   :  { %v133_v19 = vpop.f32.mrb[0].mxu0 }
  0xdf   :  { %v134_v20 = vadd.f32 %v451_v18, %v133_v19  ;;  %v513_v21 = vpop.f32.mrb[1].mxu0 }
  0xe1   :  { %537 = vmatmul.mubr.msk.f32.vlgmr.msra.gmra.mrb[14].mxu0 %vm176_vm2, %v134_v20 }
  0xe2   :  { %v138_v22 = vpop.f32.mrb[2].mxu0  ;;  %539 = vmatprep.mubr.msk.f32.mxu0 %vm622_vm0, %v623_v6 }
  0xe3   :  { %v139_v23 = vadd.f32 %v451_v18, %v138_v22  ;;  %v516_v24 = vpop.f32.mrb[3].mxu0 }
  0xe5   :  { %540 = vmatmul.mubr.msk.f32.gmra.mrb[16].mxu0 %vm176_vm2, %v139_v23 }
  0xe6   :  { %v143_v25 = vpop.f32.mrb[4].mxu0  ;;  %542 = vmatprep.mubr.msk.f32.mxu0 %vm622_vm0, %v623_v6 }
  0xe7   :  { %v144_v26 = vadd.f32 %v451_v18, %v143_v25  ;;  %v519_v27 = vpop.f32.mrb[5].mxu0 }
  0xe9   :  { %543 = vmatmul.mubr.msk.f32.gmra.mrb[18].mxu0 %vm176_vm2, %v144_v26 }
  0xea   :  { %v148_v28 = vpop.f32.mrb[6].mxu0 }
  0xeb   :  { %v149_v29 = vadd.f32 %v451_v18, %v148_v28  ;;  %v522_v30 = vpop.f32.mrb[7].mxu0 }
  0xed   :  { %546 = vmatmul.mubr.msk.f32.vlgmr.msra.gmra.mrb[0].mxu1 %vm176_vm2, %v149_v29 }
  0xee   :  { %v153_v32 = vpop.f32.mrb[8].mxu0  ;;  %548 = vmatprep.mubr.msk.f32.mxu1 %vm622_vm0, %v623_v6  ;;  %558 = vmatpush3.msra.mxu1 %v298_v31 }
  0xef   :  { %v154_v33 = vadd.f32 %v451_v18, %v153_v32  ;;  %v525_v34 = vpop.f32.mrb[9].mxu0 }
  0xf1   :  { %549 = vmatmul.mubr.msk.f32.gmra.mrb[2].mxu1 %vm176_vm2, %v154_v33 }
  0xf2   :  { %v158_v35 = vpop.f32.mrb[10].mxu0  ;;  %551 = vmatprep.mubr.msk.f32.mxu1 %vm622_vm0, %v623_v6 }
  0xf3   :  { %v159_v36 = vadd.f32 %v451_v18, %v158_v35  ;;  %v528_v37 = vpop.f32.mrb[11].mxu0 }
  0xf5   :  { %552 = vmatmul.mubr.msk.f32.gmra.mrb[4].mxu1 %vm176_vm2, %v159_v36 }
  0xf6   :  { %v163_v38 = vpop.f32.mrb[12].mxu0  ;;  %554 = vmatprep.mubr.msk.f32.mxu1 %vm622_vm0, %v623_v6 }
  0xf7   :  { %v164_v39 = vadd.f32 %v451_v18, %v163_v38  ;;  %v531_v40 = vpop.f32.mrb[13].mxu0 }
  0xf9   :  { %555 = vmatmul.mubr.msk.f32.gmra.mrb[6].mxu1 %vm176_vm2, %v164_v39 }
  0xfa   :  { %559 = vmatprep.mubr.msk.f32.mxu1 %vm622_vm0, %v623_v6 }
 0x1b4   :  { %v264_v42 = vpop.f32.mrb[14].mxu0 }
 0x1b5   :  { %v265_v43 = vadd.f32 %v459_v41, %v264_v42  ;;  %v538_v44 = vpop.f32.mrb[15].mxu0 }
 0x1b7   :  { %560 = vmatmul.mubr.msk.f32.vlgmr.msra.gmra.mrb[8].mxu1 %vm306_vm3, %v265_v43 }
 0x1b8   :  { %v269_v45 = vpop.f32.mrb[16].mxu0  ;;  %562 = vmatprep.mubr.msk.f32.mxu1 %vm622_vm0, %v623_v6 }
 0x1b9   :  { %v270_v46 = vadd.f32 %v459_v41, %v269_v45  ;;  %v541_v47 = vpop.f32.mrb[17].mxu0 }
 0x1bb   :  { %563 = vmatmul.mubr.msk.f32.gmra.mrb[10].mxu1 %vm306_vm3, %v270_v46 }
 0x1bc   :  { %v274_v48 = vpop.f32.mrb[18].mxu0  ;;  %565 = vmatprep.mubr.msk.f32.mxu1 %vm622_vm0, %v623_v6 }
 0x1bd   :  { %v275_v49 = vadd.f32 %v459_v41, %v274_v48  ;;  %v544_v50 = vpop.f32.mrb[19].mxu0 }
 0x1bf   :  { %566 = vmatmul.mubr.msk.f32.gmra.mrb[12].mxu1 %vm306_vm3, %v275_v49 }
 0x1c0   :  { %v279_v51 = vpop.f32.mrb[0].mxu1  ;;  %568 = vmatprep.mubr.msk.f32.mxu1 %vm622_vm0, %v623_v6 }
 0x1c1   :  { %v280_v52 = vadd.f32 %v459_v41, %v279_v51  ;;  %v547_v53 = vpop.f32.mrb[1].mxu1 }
 0x1c3   :  { %569 = vmatmul.mubr.msk.f32.gmra.mrb[14].mxu1 %vm306_vm3, %v280_v52 }
 0x1c4   :  { %v284_v54 = vpop.f32.mrb[2].mxu1  ;;  %571 = vmatprep.mubr.msk.f32.mxu1 %vm622_vm0, %v623_v6 }
 0x1c5   :  { %v285_v55 = vadd.f32 %v459_v41, %v284_v54  ;;  %v550_v56 = vpop.f32.mrb[3].mxu1 }
 0x1c7   :  { %572 = vmatmul.mubr.msk.f32.gmra.mrb[16].mxu1 %vm306_vm3, %v285_v55 }
 0x1c8   :  { %v289_v57 = vpop.f32.mrb[4].mxu1  ;;  %574 = vmatprep.mubr.msk.f32.mxu1 %vm622_vm0, %v623_v6 }
 0x1c9   :  { %v290_v58 = vadd.f32 %v459_v41, %v289_v57  ;;  %v553_v59 = vpop.f32.mrb[5].mxu1 }
 0x1cb   :  { %575 = vmatmul.mubr.msk.f32.gmra.mrb[18].mxu1 %vm306_vm3, %v290_v58 }
 0x1cc   :  { %v294_v60 = vpop.f32.mrb[6].mxu1  ;;  %577 = vmatprep.mubr.msk.f32.mxu1 %vm622_vm0, %v623_v6 }
 0x1cd   :  { %v295_v61 = vadd.f32 %v459_v41, %v294_v60  ;;  %v556_v62 = vpop.f32.mrb[7].mxu1 }
 0x1cf   :  { %578 = vmatmul.mubr.msk.f32.gmra.mrb[20].mxu1 %vm306_vm3, %v295_v61 }
 0x28a   :  { %v394_v0 = vpop.f32.mrb[8].mxu1 }
 0x28b   :  { %v395_v1 = vadd.f32 %v467_v63, %v394_v0  ;;  %v561_v2 = vpop.f32.mrb[9].mxu1 }
 0x28d   :  { %428 = vst [vmem:[#allocation2] sm:$0xff] %v395_v1 }
 0x28e   :  { %v399_v3 = vpop.f32.mrb[10].mxu1 }
 0x28f   :  { %v400_v4 = vadd.f32 %v467_v63, %v399_v3  ;;  %v564_v5 = vpop.f32.mrb[11].mxu1 }
 0x291   :  { %429 = vst [vmem:[#allocation2 + $0x8] sm:$0xff] %v400_v4 }
 0x292   :  { %v404_v7 = vpop.f32.mrb[12].mxu1 }
 0x293   :  { %v405_v8 = vadd.f32 %v467_v63, %v404_v7  ;;  %v567_v9 = vpop.f32.mrb[13].mxu1 }
 0x295   :  { %430 = vst [vmem:[#allocation2 + $0x10] sm:$0xff] %v405_v8 }
 0x296   :  { %v409_v6 = vpop.f32.mrb[14].mxu1 }
 0x297   :  { %v410_v10 = vadd.f32 %v467_v63, %v409_v6  ;;  %v570_v11 = vpop.f32.mrb[15].mxu1 }
 0x299   :  { %431 = vst [vmem:[#allocation2 + $0x18] sm:$0xff] %v410_v10 }
 0x29a   :  { %v414_v12 = vpop.f32.mrb[16].mxu1 }
 0x29b   :  { %v415_v13 = vadd.f32 %v467_v63, %v414_v12  ;;  %v573_v14 = vpop.f32.mrb[17].mxu1 }
 0x29d   :  { %432 = vst [vmem:[#allocation2 + $0x20] sm:$0xff] %v415_v13 }
 0x29e   :  { %v419_v15 = vpop.f32.mrb[18].mxu1 }
 0x29f   :  { %v420_v16 = vadd.f32 %v467_v63, %v419_v15  ;;  %v576_v17 = vpop.f32.mrb[19].mxu1 }
 0x2a1   :  { %433 = vst [vmem:[#allocation2 + $0x28] sm:$0xff] %v420_v16 }
 0x2a2   :  { %v424_v18 = vpop.f32.mrb[20].mxu1 }
 0x2a3   :  { %v425_v19 = vadd.f32 %v467_v63, %v424_v18  ;;  %v579_v20 = vpop.f32.mrb[21].mxu1 }
 0x2a5   :  { %434 = vst [vmem:[#allocation2 + $0x30] sm:$0xff] %v425_v19 }
 0x2a6   :  { %608 = shalt.err (!%p605_p4)
}
 0x2a7   :  { %s609_s10 = scalar_lea.hbm %s801_s7, 896 }
 0x2a8   :  { %p610_p5 = scmp.ne.s32.totalorder %s801_s7, %s609_s10  ;;  %p613_p6 = scmp.lt.u32.totalorder %s609_s10, %s801_s7 }
 0x2aa   :  { %p615_p7 = pnand %p613_p6, %p610_p5 }
 0x2ac   :  { %618 = shalt.err (!%p615_p7)
}
 0x2ad   :  { %s625_s14 = smov 128   ;;  %s626_s15 = smov 8  }
 0x2ae   :  { %446 = dma.vmem_to_hbm [thread:$0]  %s441_s29, 896, %s801_s7, [#allocation3], %s625_s14, %s625_s14, %s626_s15  }
 0x2af   :  { %619 = dma.done.wait [#allocation3], 896  }
 0x2b0   :  { %620 = vsyncadd [#allocation3], 4294966400 }
 0x2b1   :  { %450 = vsyncpa [#allocation3], 1 }

// kernel: tpu_custom_call.1
= control target key start
LH: loop header
LB: loop body
LE: loop exit
PB: predicated region body
PF: predicated region fallthrough
CT: control target
= control target key end

     0   :  { %v621_v3 = vmov 0.0|0.0   ;;  %vm622_vm0 = vmmov 0   ;;  %v623_v6 = vmov 0.0   ;;  %s794_s0 = inlined_call_operand.vmem [shape: f32[56,32], index: 0, kind: input, shape index: {}]   ;;  %s795_s1 = inlined_call_operand.vmem [shape: f32[32,16], index: 1, kind: input, shape index: {}]   ;;  %s796_s2 = inlined_call_operand.vmem [shape: f32[1,16], index: 2, kind: input, shape index: {}]   ;;  %s797_s3 = inlined_call_operand.vmem [shape: f32[16,8], index: 3, kind: input, shape index: {}]   ;;  %s798_s4 = inlined_call_operand.vmem [shape: f32[1,8], index: 4, kind: input, shape index: {}]   ;;  %s799_s5 = inlined_call_operand.vmem [shape: f32[8,128], index: 5, kind: input, shape index: {}]   ;;  %s800_s6 = inlined_call_operand.vmem [shape: f32[1,128], index: 6, kind: input, shape index: {}]   ;;  %s801_s7 = inlined_call_operand.hbm [shape: f32[56,128], index: 7, kind: output, shape index: {}]  }
   0x1   :  { %v34_v0 = vld [vmem:[%s795_s1] sm:$0xff]  ;;  %v35_v1 = vld [vmem:[%s795_s1 + $0x8] sm:$0xff]  ;;  %v36_v2 = vld [vmem:[%s795_s1 + $0x10] sm:$0xff]  ;;  %580 = vmatprep.subr.bf16.mxu0 %v621_v3  ;;  %511 = vmatprep.mubr.msk.f32.mxu0 %vm622_vm0, %v623_v6 }
   0x2   :  { %v581_v4 = vpack.c.bf16 %v35_v1, %v34_v0  ;;  %v37_v5 = vld [vmem:[%s795_s1 + $0x18] sm:$0xff]  ;;  %589 = vmatprep.subr.bf16.mxu1 %v621_v3  ;;  %545 = vmatprep.mubr.msk.f32.mxu1 %vm622_vm0, %v623_v6  ;;  %v167_v8 = vld [vmem:[%s797_s3] sm:$0xff]  ;;  %v168_v9 = vld [vmem:[%s797_s3 + $0x8] sm:$0xff] }
   0x3   :  { %v584_v7 = vpack.c.bf16 %v37_v5, %v36_v2 }
   0x4   :  { %582 = vmatpush3.bf16.msra.mxu0 %v581_v4 }
   0x5   :  { %583 = vmatprep.subr.bf16.mxu0 %v621_v3 }
   0x6   :  { %12 = vsyncpa [#allocation3], 0  ;;  %v587_v10 = vpack.c.bf16 %v168_v9, %v167_v8  ;;  %v27_v11 = vld [vmem:[%s794_s0] sm:$0xff]  ;;  %vm45_vm1 = vcmask 261120   ;;  %v28_v12 = vld [vmem:[%s794_s0 + $0x8] sm:$0xff]  ;;  %vm176_vm2 = vcmask 130048  }
   0x7   :  { %v29_v13 = vld [vmem:[%s794_s0 + $0x10] sm:$0xff]  ;;  %v30_v14 = vld [vmem:[%s794_s0 + $0x18] sm:$0xff]  ;;  %v31_v15 = vld [vmem:[%s794_s0 + $0x20] sm:$0xff]  ;;  %vm306_vm3 = vcmask 64512  }
   0x8   :  { %585 = vmatpush3.bf16.msra.mxu0 %v584_v7  ;;  %590 = vmatpush3.bf16.msra.mxu1 %v587_v10  ;;  %v32_v16 = vld [vmem:[%s794_s0 + $0x28] sm:$0xff]  ;;  %v33_v17 = vld [vmem:[%s794_s0 + $0x30] sm:$0xff]  ;;  %v451_v18 = vld [vmem:[%s796_s2] ss:$0 sm:$0xff] }
   0x9   :  { %586 = vmatprep.subr.bf16.mxu0 %v621_v3  ;;  %557 = vmatprep.subr.mxu1 %v623_v6  ;;  %v298_v31 = vld [vmem:[%s799_s5] sm:$0xff] }
   0xa   :  { %v459_v41 = vld [vmem:[%s798_s4] ss:$0 sm:$0xff] }
   0xb   :  { %512 = vmatmul.mubr.msk.f32.vlgmr.msra.gmra.mrb[0].mxu0 %vm45_vm1, %v27_v11  ;;  %v467_v63 = vld [vmem:[%s800_s6] ss:$0 sm:$0xff]  ;;  %s624_s6 = smov [#allocation2]  }
   0xc   :  { %514 = vmatprep.mubr.msk.f32.mxu0 %vm622_vm0, %v623_v6  ;;  %588 = vmatpush3.bf16.msra.mxu0 %v587_v10  ;;  %s440_s29 = sshll.u32 %s624_s6, 4  ;;  %s441_s29 = int_to_ptr.vmem [resolvable:$true] %s440_s29 }
   0xd   :  { %s597_s30 = scalar_lea.vmem %s441_s29, 896  ;;  %p602_p1 = scmp.lt.s32.totalorder %s441_s29, %s441_s29 }
   0xe   :  { %p598_p0 = scmp.ne.s32.totalorder %s441_s29, %s597_s30  ;;  %p603_p2 = scmp.lt.s32.totalorder %s597_s30, %s597_s30 }
   0xf   :  { %515 = vmatmul.mubr.msk.f32.gmra.mrb[2].mxu0 %vm45_vm1, %v28_v12 }
  0x10   :  { %517 = vmatprep.mubr.msk.f32.mxu0 %vm622_vm0, %v623_v6  ;;  %p604_p3 = por %p603_p2, %p602_p1 }
  0x12   :  { %p605_p4 = pnand %p604_p3, %p598_p0 }
  0x13   :  { %518 = vmatmul.mubr.msk.f32.gmra.mrb[4].mxu0 %vm45_vm1, %v29_v13 }
  0x14   :  { %520 = vmatprep.mubr.msk.f32.mxu0 %vm622_vm0, %v623_v6 }
  0x17   :  { %521 = vmatmul.mubr.msk.f32.gmra.mrb[6].mxu0 %vm45_vm1, %v30_v14 }
  0x18   :  { %523 = vmatprep.mubr.msk.f32.mxu0 %vm622_vm0, %v623_v6 }
  0x1b   :  { %524 = vmatmul.mubr.msk.f32.gmra.mrb[8].mxu0 %vm45_vm1, %v31_v15 }
  0x1c   :  { %526 = vmatprep.mubr.msk.f32.mxu0 %vm622_vm0, %v623_v6 }
  0x1f   :  { %527 = vmatmul.mubr.msk.f32.gmra.mrb[10].mxu0 %vm45_vm1, %v32_v16 }
  0x20   :  { %529 = vmatprep.mubr.msk.f32.mxu0 %vm622_vm0, %v623_v6 }
  0x23   :  { %530 = vmatmul.mubr.msk.f32.gmra.mrb[12].mxu0 %vm45_vm1, %v33_v17 }
  0x24   :  { %536 = vmatprep.mubr.msk.f32.mxu0 %vm622_vm0, %v623_v6 }
  0xde   :  { %v133_v19 = vpop.f32.mrb[0].mxu0 }
  0xdf   :  { %v134_v20 = vadd.f32 %v451_v18, %v133_v19  ;;  %v513_v21 = vpop.f32.mrb[1].mxu0 }
  0xe1   :  { %537 = vmatmul.mubr.msk.f32.vlgmr.msra.gmra.mrb[14].mxu0 %vm176_vm2, %v134_v20 }
  0xe2   :  { %v138_v22 = vpop.f32.mrb[2].mxu0  ;;  %539 = vmatprep.mubr.msk.f32.mxu0 %vm622_vm0, %v623_v6 }
  0xe3   :  { %v139_v23 = vadd.f32 %v451_v18, %v138_v22  ;;  %v516_v24 = vpop.f32.mrb[3].mxu0 }
  0xe5   :  { %540 = vmatmul.mubr.msk.f32.gmra.mrb[16].mxu0 %vm176_vm2, %v139_v23 }
  0xe6   :  { %v143_v25 = vpop.f32.mrb[4].mxu0  ;;  %542 = vmatprep.mubr.msk.f32.mxu0 %vm622_vm0, %v623_v6 }
  0xe7   :  { %v144_v26 = vadd.f32 %v451_v18, %v143_v25  ;;  %v519_v27 = vpop.f32.mrb[5].mxu0 }
  0xe9   :  { %543 = vmatmul.mubr.msk.f32.gmra.mrb[18].mxu0 %vm176_vm2, %v144_v26 }
  0xea   :  { %v148_v28 = vpop.f32.mrb[6].mxu0 }
  0xeb   :  { %v149_v29 = vadd.f32 %v451_v18, %v148_v28  ;;  %v522_v30 = vpop.f32.mrb[7].mxu0 }
  0xed   :  { %546 = vmatmul.mubr.msk.f32.vlgmr.msra.gmra.mrb[0].mxu1 %vm176_vm2, %v149_v29 }
  0xee   :  { %v153_v32 = vpop.f32.mrb[8].mxu0  ;;  %548 = vmatprep.mubr.msk.f32.mxu1 %vm622_vm0, %v623_v6  ;;  %558 = vmatpush3.msra.mxu1 %v298_v31 }
  0xef   :  { %v154_v33 = vadd.f32 %v451_v18, %v153_v32  ;;  %v525_v34 = vpop.f32.mrb[9].mxu0 }
  0xf1   :  { %549 = vmatmul.mubr.msk.f32.gmra.mrb[2].mxu1 %vm176_vm2, %v154_v33 }
  0xf2   :  { %v158_v35 = vpop.f32.mrb[10].mxu0  ;;  %551 = vmatprep.mubr.msk.f32.mxu1 %vm622_vm0, %v623_v6 }
  0xf3   :  { %v159_v36 = vadd.f32 %v451_v18, %v158_v35  ;;  %v528_v37 = vpop.f32.mrb[11].mxu0 }
  0xf5   :  { %552 = vmatmul.mubr.msk.f32.gmra.mrb[4].mxu1 %vm176_vm2, %v159_v36 }
  0xf6   :  { %v163_v38 = vpop.f32.mrb[12].mxu0  ;;  %554 = vmatprep.mubr.msk.f32.mxu1 %vm622_vm0, %v623_v6 }
  0xf7   :  { %v164_v39 = vadd.f32 %v451_v18, %v163_v38  ;;  %v531_v40 = vpop.f32.mrb[13].mxu0 }
  0xf9   :  { %555 = vmatmul.mubr.msk.f32.gmra.mrb[6].mxu1 %vm176_vm2, %v164_v39 }
  0xfa   :  { %559 = vmatprep.mubr.msk.f32.mxu1 %vm622_vm0, %v623_v6 }
 0x1b4   :  { %v264_v42 = vpop.f32.mrb[14].mxu0 }
 0x1b5   :  { %v265_v43 = vadd.f32 %v459_v41, %v264_v42  ;;  %v538_v44 = vpop.f32.mrb[15].mxu0 }
 0x1b7   :  { %560 = vmatmul.mubr.msk.f32.vlgmr.msra.gmra.mrb[8].mxu1 %vm306_vm3, %v265_v43 }
 0x1b8   :  { %v269_v45 = vpop.f32.mrb[16].mxu0  ;;  %562 = vmatprep.mubr.msk.f32.mxu1 %vm622_vm0, %v623_v6 }
 0x1b9   :  { %v270_v46 = vadd.f32 %v459_v41, %v269_v45  ;;  %v541_v47 = vpop.f32.mrb[17].mxu0 }
 0x1bb   :  { %563 = vmatmul.mubr.msk.f32.gmra.mrb[10].mxu1 %vm306_vm3, %v270_v46 }
 0x1bc   :  { %v274_v48 = vpop.f32.mrb[18].mxu0  ;;  %565 = vmatprep.mubr.msk.f32.mxu1 %vm622_vm0, %v623_v6 }
 0x1bd   :  { %v275_v49 = vadd.f32 %v459_v41, %v274_v48  ;;  %v544_v50 = vpop.f32.mrb[19].mxu0 }
 0x1bf   :  { %566 = vmatmul.mubr.msk.f32.gmra.mrb[12].mxu1 %vm306_vm3, %v275_v49 }
 0x1c0   :  { %v279_v51 = vpop.f32.mrb[0].mxu1  ;;  %568 = vmatprep.mubr.msk.f32.mxu1 %vm622_vm0, %v623_v6 }
 0x1c1   :  { %v280_v52 = vadd.f32 %v459_v41, %v279_v51  ;;  %v547_v53 = vpop.f32.mrb[1].mxu1 }
 0x1c3   :  { %569 = vmatmul.mubr.msk.f32.gmra.mrb[14].mxu1 %vm306_vm3, %v280_v52 }
 0x1c4   :  { %v284_v54 = vpop.f32.mrb[2].mxu1  ;;  %571 = vmatprep.mubr.msk.f32.mxu1 %vm622_vm0, %v623_v6 }
 0x1c5   :  { %v285_v55 = vadd.f32 %v459_v41, %v284_v54  ;;  %v550_v56 = vpop.f32.mrb[3].mxu1 }
 0x1c7   :  { %572 = vmatmul.mubr.msk.f32.gmra.mrb[16].mxu1 %vm306_vm3, %v285_v55 }
 0x1c8   :  { %v289_v57 = vpop.f32.mrb[4].mxu1  ;;  %574 = vmatprep.mubr.msk.f32.mxu1 %vm622_vm0, %v623_v6 }
 0x1c9   :  { %v290_v58 = vadd.f32 %v459_v41, %v289_v57  ;;  %v553_v59 = vpop.f32.mrb[5].mxu1 }
 0x1cb   :  { %575 = vmatmul.mubr.msk.f32.gmra.mrb[18].mxu1 %vm306_vm3, %v290_v58 }
 0x1cc   :  { %v294_v60 = vpop.f32.mrb[6].mxu1  ;;  %577 = vmatprep.mubr.msk.f32.mxu1 %vm622_vm0, %v623_v6 }
 0x1cd   :  { %v295_v61 = vadd.f32 %v459_v41, %v294_v60  ;;  %v556_v62 = vpop.f32.mrb[7].mxu1 }
 0x1cf   :  { %578 = vmatmul.mubr.msk.f32.gmra.mrb[20].mxu1 %vm306_vm3, %v295_v61 }
 0x28a   :  { %v394_v0 = vpop.f32.mrb[8].mxu1 }
 0x28b   :  { %v395_v1 = vadd.f32 %v467_v63, %v394_v0  ;;  %v561_v2 = vpop.f32.mrb[9].mxu1 }
 0x28d   :  { %428 = vst [vmem:[#allocation2] sm:$0xff] %v395_v1 }
 0x28e   :  { %v399_v3 = vpop.f32.mrb[10].mxu1 }
 0x28f   :  { %v400_v4 = vadd.f32 %v467_v63, %v399_v3  ;;  %v564_v5 = vpop.f32.mrb[11].mxu1 }
 0x291   :  { %429 = vst [vmem:[#allocation2 + $0x8] sm:$0xff] %v400_v4 }
 0x292   :  { %v404_v7 = vpop.f32.mrb[12].mxu1 }
 0x293   :  { %v405_v8 = vadd.f32 %v467_v63, %v404_v7  ;;  %v567_v9 = vpop.f32.mrb[13].mxu1 }
 0x295   :  { %430 = vst [vmem:[#allocation2 + $0x10] sm:$0xff] %v405_v8 }
 0x296   :  { %v409_v6 = vpop.f32.mrb[14].mxu1 }
 0x297   :  { %v410_v10 = vadd.f32 %v467_v63, %v409_v6  ;;  %v570_v11 = vpop.f32.mrb[15].mxu1 }
 0x299   :  { %431 = vst [vmem:[#allocation2 + $0x18] sm:$0xff] %v410_v10 }
 0x29a   :  { %v414_v12 = vpop.f32.mrb[16].mxu1 }
 0x29b   :  { %v415_v13 = vadd.f32 %v467_v63, %v414_v12  ;;  %v573_v14 = vpop.f32.mrb[17].mxu1 }
 0x29d   :  { %432 = vst [vmem:[#allocation2 + $0x20] sm:$0xff] %v415_v13 }
 0x29e   :  { %v419_v15 = vpop.f32.mrb[18].mxu1 }
 0x29f   :  { %v420_v16 = vadd.f32 %v467_v63, %v419_v15  ;;  %v576_v17 = vpop.f32.mrb[19].mxu1 }
 0x2a1   :  { %433 = vst [vmem:[#allocation2 + $0x28] sm:$0xff] %v420_v16 }
 0x2a2   :  { %v424_v18 = vpop.f32.mrb[20].mxu1 }
 0x2a3   :  { %v425_v19 = vadd.f32 %v467_v63, %v424_v18  ;;  %v579_v20 = vpop.f32.mrb[21].mxu1 }
 0x2a5   :  { %434 = vst [vmem:[#allocation2 + $0x30] sm:$0xff] %v425_v19 }
 0x2a6   :  { %608 = shalt.err (!%p605_p4)
}
 0x2a7   :  { %s609_s10 = scalar_lea.hbm %s801_s7, 896 }
 0x2a8   :  { %p610_p5 = scmp.ne.s32.totalorder %s801_s7, %s609_s10  ;;  %p613_p6 = scmp.lt.u32.totalorder %s609_s10, %s801_s7 }
 0x2aa   :  { %p615_p7 = pnand %p613_p6, %p610_p5 }
 0x2ac   :  { %618 = shalt.err (!%p615_p7)
}
 0x2ad   :  { %s625_s14 = smov 128   ;;  %s626_s15 = smov 8  }
 0x2ae   :  { %446 = dma.vmem_to_hbm [thread:$0]  %s441_s29, 896, %s801_s7, [#allocation3], %s625_s14, %s625_s14, %s626_s15  }
 0x2af   :  { %619 = dma.done.wait [#allocation3], 896  }
 0x2b0   :  { %620 = vsyncadd [#allocation3], 4294966400 }
 0x2b1   :  { %450 = vsyncpa [#allocation3], 1 }

</bundles_post_ra>
